<compile_context>
chip_gen: v7x
topology: tpu7x:2x2x1
jax: 0.10.0
libtpu: 0.0.40
codegen_flags: <defaults>
</compile_context>

<pallas_src>
import functools

import jax
import jax.numpy as jnp
from jax.experimental import pallas as pl
from jax.experimental.pallas import tpu as pltpu


PREFERRED_TM = 512                      # row tile (output block rows)
PREFERRED_TK = 2048                     # reduction tile (A columns per step)
RESIDENT_Y_BUDGET = 12 * 1024 * 1024    # bytes of Y kept fully VMEM-resident


def _round_up(x, m):
    return ((x + m - 1) // m) * m


def _divisor_tile_units(np_units, cap_units):
    """Largest divisor of np_units that is <= cap_units (>= 1)."""
    cap = max(1, min(cap_units, np_units))
    best = 1
    for d in range(1, np_units + 1):
        if np_units % d == 0 and d <= cap:
            best = d
    return best


def _gcn_kernel(a_ref, y_ref, b_ref, o_ref, acc_ref, *, tk, resident_y):
    """Grid (i, k): acc[i] += A[i, k] @ Y[k]; bias + ReLU at the last k."""
    k = pl.program_id(1)

    @pl.when(k == 0)
    def _():
        acc_ref[...] = jnp.zeros_like(acc_ref)

    if resident_y:
        # Y is fully VMEM-resident; take the k-th reduction slice in place.
        off = pl.multiple_of(k * tk, tk)
        y = y_ref[pl.ds(off, tk), :]
    else:
        y = y_ref[...]

    acc_ref[...] += jnp.dot(a_ref[...], y, preferred_element_type=jnp.float32)

    @pl.when(k == pl.num_programs(1) - 1)
    def _():
        o_ref[...] = jnp.maximum(acc_ref[...] + b_ref[...],
                                 jnp.float32(0.0)).astype(o_ref.dtype)


@functools.partial(jax.jit, static_argnames=("mxu_dtype",))
def _gcn_forward(A, Xf, W, b, mxu_dtype=jnp.bfloat16):
    N = A.shape[0]
    H = W.shape[1]

    # --- hoisted narrow matmul: Y = dropout(X) @ W  (plain XLA, f32) --------
    Y = jnp.dot(Xf, W.astype(jnp.float32), preferred_element_type=jnp.float32)

    # --- lane/sublane padding (128 only; skipped when already aligned) ------
    Np = _round_up(N, 128)
    Hp = _round_up(H, 128)
    asize = jnp.dtype(mxu_dtype).itemsize

    if N == Np:
        A_p = A.astype(mxu_dtype)
    else:
        A_p = jnp.zeros((Np, Np), mxu_dtype).at[:N, :N].set(A.astype(mxu_dtype))

    if (N, H) == (Np, Hp):
        Y_p = Y.astype(mxu_dtype)
    else:
        Y_p = jnp.zeros((Np, Hp), mxu_dtype).at[:N, :H].set(Y.astype(mxu_dtype))

    b_p = jnp.zeros((1, Hp), jnp.float32).at[0, :H].set(b.astype(jnp.float32))

    # --- tile selection (divisors of Np/128: no N rounding, no ragged tiles) -
    units = Np // 128
    # cap TM at Np//2 so the "parallel" row axis has >= 2 tiles (v7x 2 TCs).
    tm_units = _divisor_tile_units(units, min(PREFERRED_TM // 128,
                                              max(1, units // 2)))
    tk_units = _divisor_tile_units(units, PREFERRED_TK // 128)
    TM, TK = tm_units * 128, tk_units * 128

    # --- resident vs streamed Y ----------------------------------------------
    resident_y = (Np * Hp * asize) <= RESIDENT_Y_BUDGET
    if resident_y:
        y_spec = pl.BlockSpec((Np, Hp), lambda i, k: (0, 0))   # DMA'd once
    else:
        y_spec = pl.BlockSpec((TK, Hp), lambda i, k: (k, 0))   # streamed per-k

    grid = (Np // TM, Np // TK)

    # VMEM budget: double-buffered A tiles + Y + output blocks + accumulator,
    # with headroom; kept under the v7x 64 MiB/TC physical limit.  On v5e/v6e
    # this is above the 16/32 MiB scoped defaults, which unlocks larger tiles.
    need = (2 * TM * TK * asize
            + (2 * Np * Hp * asize if resident_y else 2 * TK * Hp * asize)
            + 2 * TM * Hp * 4 + TM * Hp * 4 + 16 * Hp * 4)
    vmem_limit = int(min(48 * 1024 * 1024, max(32 * 1024 * 1024, 2 * need)))

    kernel = functools.partial(_gcn_kernel, tk=TK, resident_y=resident_y)

    out = pl.pallas_call(
        kernel,
        out_shape=jax.ShapeDtypeStruct((Np, Hp), jnp.float32),
        grid_spec=pltpu.PrefetchScalarGridSpec(
            num_scalar_prefetch=0,
            grid=grid,
            in_specs=[
                pl.BlockSpec((TM, TK), lambda i, k: (i, k)),   # A tile (streamed)
                y_spec,                                        # Y
                pl.BlockSpec((1, Hp), lambda i, k: (0, 0)),    # bias (resident)
            ],
            out_specs=pl.BlockSpec((TM, Hp), lambda i, k: (i, 0)),
            scratch_shapes=[pltpu.VMEM((TM, Hp), jnp.float32)],
        ),
        compiler_params=pltpu.CompilerParams(
            dimension_semantics=("parallel", "arbitrary"),
            vmem_limit_bytes=vmem_limit,
        ),
    )(A_p, Y_p, b_p)

    return out[:N, :H]


def gcn_for_feature_1(A, X, W, b, *, p=0.5, training=False, rng=None,
                      mxu_dtype=jnp.bfloat16):
    """A:[N,N], X:[N,Din], W:[Din,H] (== nn.Linear.weight.T), b:[H] -> [N,H] f32."""
    N = A.shape[0]
    Din = X.shape[1]
    H = W.shape[1]
    assert A.shape == (N, N) and X.shape[0] == N
    assert W.shape[0] == Din and b.shape == (H,)

    # --- dropout (wrapper side; identity in eval mode) -----------------------
    Xf = X.astype(jnp.float32)
    if training and p > 0.0:
        if rng is None:
            rng = jax.random.PRNGKey(0)
        keep = jax.random.bernoulli(rng, 1.0 - p, Xf.shape)
        Xf = jnp.where(keep, Xf * (1.0 / (1.0 - p)), 0.0)

    return _gcn_forward(A, Xf, W, b, mxu_dtype=mxu_dtype)


def _reference(A, X, W, b):
    # Pure-JAX reference in the original association: ReLU((A @ X) @ W + b).
    f = A.astype(jnp.float32) @ X.astype(jnp.float32)
    return jnp.maximum(f @ W.astype(jnp.float32) + b.astype(jnp.float32)[None, :], 0.0)


if __name__ == "__main__":
    # Shapes implied by the module: N nodes, input_dim, hidden_dim, dropout p.
    N, input_dim, hidden_dim, p = 16, 32, 32, 0.5

    key = jax.random.PRNGKey(0)
    k_a, k_x, k_w, k_b, k_drop = jax.random.split(key, 5)

    # Row-normalized adjacency and node features.
    A_raw = jax.random.uniform(k_a, (N, N), dtype=jnp.float32)
    A = A_raw / jnp.sum(A_raw, axis=-1, keepdims=True)
    X = jax.random.normal(k_x, (N, input_dim), dtype=jnp.float32)

    # nn.Linear-style init: U(-1/sqrt(in_dim), 1/sqrt(in_dim)); W == weight.T.
    bound = 1.0 / (input_dim ** 0.5)
    W = jax.random.uniform(k_w, (input_dim, hidden_dim), dtype=jnp.float32,
                           minval=-bound, maxval=bound)
    b = jax.random.uniform(k_b, (hidden_dim,), dtype=jnp.float32,
                           minval=-bound, maxval=bound)

    ref = _reference(A, X, W, b)

    # --- eval mode, default bf16 MXU feed (perf path) -----------------------
    out = jax.block_until_ready(gcn_for_feature_1(A, X, W, b, p=p, training=False))
    assert out.shape == (N, hidden_dim)
    assert jnp.allclose(out, ref, atol=5e-2, rtol=5e-2), "bf16 kernel mismatch"

    # --- eval mode, strict f32 mode ------------------------------------------
    out_f32 = jax.block_until_ready(
        gcn_for_feature_1(A, X, W, b, p=p, training=False, mxu_dtype=jnp.float32))
    assert jnp.allclose(out_f32, ref, atol=1e-4, rtol=1e-4), \
        "f32 kernel mismatch vs reference"

    # --- training mode: wrapper-side inverted dropout, check numerically -----
    keep = jax.random.bernoulli(k_drop, 1.0 - p, X.shape)
    X_dropped = jnp.where(keep, X * (1.0 / (1.0 - p)), 0.0)
    ref_train = _reference(A, X_dropped, W, b)
    out_train = jax.block_until_ready(
        gcn_for_feature_1(A, X, W, b, p=p, training=True, rng=k_drop,
                          mxu_dtype=jnp.float32))
    assert out_train.shape == (N, hidden_dim)
    assert jnp.allclose(out_train, ref_train, atol=1e-4, rtol=1e-4), \
        "training-mode kernel mismatch vs reference"

    print("KERNEL_OK")
</pallas_src>

<mosaic_0001>
module attributes {stable_mosaic.version = 11 : i64} {
  func.func @_gcn_kernel(%arg0: i32, %arg1: i32, %arg2: memref<128x128xbf16, #tpu.memory_space<vmem>>, %arg3: memref<128x128xbf16, #tpu.memory_space<vmem>>, %arg4: memref<1x128xf32, #tpu.memory_space<vmem>>, %arg5: memref<128x128xf32, #tpu.memory_space<vmem>>, %arg6: memref<128x128xf32, #tpu.memory_space<vmem>>) attributes {dimension_semantics = [#tpu.dimension_semantics<parallel>, #tpu.dimension_semantics<arbitrary>], iteration_bounds = array<i64: 1, 1>, scalar_prefetch = 0 : i64, scratch_operands = 1 : i64, tpu.core_type = #tpu.core_type<tc>, window_params = [{transform_indices = @transform_0, window_bounds = array<i64: 128, 128>}, {pipeline_mode = #tpu.pipeline_mode<synchronous>, transform_indices = @transform_1, window_bounds = array<i64: 128, 128>}, {pipeline_mode = #tpu.pipeline_mode<synchronous>, transform_indices = @transform_2, window_bounds = array<i64: 1, 128>}, {transform_indices = @transform_3, window_bounds = array<i64: 128, 128>}]} {
    %c0_i32 = arith.constant 0 : i32
    %0 = arith.cmpi eq, %arg1, %c0_i32 : i32
    %1 = arith.extui %0 : i1 to i32
    %c0_i32_0 = arith.constant 0 : i32
    %2 = arith.cmpi ne, %1, %c0_i32_0 : i32
    scf.if %2 {
      %cst_9 = arith.constant 0.000000e+00 : f32
      %15 = vector.broadcast %cst_9 : f32 to vector<128x128xf32>
      %c0_10 = arith.constant 0 : index
      %c0_11 = arith.constant 0 : index
      %16 = vector.load %arg6[%c0_10, %c0_11] : memref<128x128xf32, #tpu.memory_space<vmem>>, vector<128x128xf32>
      tpu.vector_store %arg6[%c0_10, %c0_11], %15 {strides = array<i32>} : memref<128x128xf32, #tpu.memory_space<vmem>>, vector<128x128xf32>,
    } else {
    }
    %c128_i32 = arith.constant 128 : i32
    %3 = arith.muli %arg1, %c128_i32 : i32
    %4 = tpu.assume_multiple %3, 128 : i32
    %5 = arith.index_cast %4 : i32 to index
    %c0 = arith.constant 0 : index
    %6 = vector.load %arg3[%5, %c0] : memref<128x128xbf16, #tpu.memory_space<vmem>>, vector<128x128xbf16>
    %c0_1 = arith.constant 0 : index
    %c0_2 = arith.constant 0 : index
    %7 = vector.load %arg6[%c0_1, %c0_2] : memref<128x128xf32, #tpu.memory_space<vmem>>, vector<128x128xf32>
    %c0_3 = arith.constant 0 : index
    %c0_4 = arith.constant 0 : index
    %8 = vector.load %arg2[%c0_3, %c0_4] : memref<128x128xbf16, #tpu.memory_space<vmem>>, vector<128x128xbf16>
    %cst = arith.constant dense<0.000000e+00> : vector<128x128xf32>
    %9 = tpu.matmul %8, %6, %cst {dimension_numbers = #tpu.dot_dimension_numbers<[1], [0], [0], [1], [0, 0, 1, 1], [], []>} : vector<128x128xbf16>, vector<128x128xbf16>, vector<128x128xf32> -> vector<128x128xf32>
    %10 = arith.addf %7, %9 : vector<128x128xf32>
    %c0_5 = arith.constant 0 : index
    %c0_6 = arith.constant 0 : index
    %11 = vector.load %arg6[%c0_5, %c0_6] : memref<128x128xf32, #tpu.memory_space<vmem>>, vector<128x128xf32>
    tpu.vector_store %arg6[%c0_5, %c0_6], %10 {strides = array<i32>} : memref<128x128xf32, #tpu.memory_space<vmem>>, vector<128x128xf32>,
    %c0_i32_7 = arith.constant 0 : i32
    %12 = arith.cmpi eq, %arg1, %c0_i32_7 : i32
    %13 = arith.extui %12 : i1 to i32
    %c0_i32_8 = arith.constant 0 : i32
    %14 = arith.cmpi ne, %13, %c0_i32_8 : i32
    scf.if %14 {
      %c0_9 = arith.constant 0 : index
      %c0_10 = arith.constant 0 : index
      %15 = vector.load %arg6[%c0_9, %c0_10] : memref<128x128xf32, #tpu.memory_space<vmem>>, vector<128x128xf32>
      %c0_11 = arith.constant 0 : index
      %c0_12 = arith.constant 0 : index
      %16 = vector.load %arg4[%c0_11, %c0_12] : memref<1x128xf32, #tpu.memory_space<vmem>>, vector<1x128xf32>
      %17 = vector.broadcast %16 : vector<1x128xf32> to vector<128x128xf32>
      %18 = arith.addf %15, %17 : vector<128x128xf32>
      %cst_13 = arith.constant 0.000000e+00 : f32
      %19 = vector.broadcast %cst_13 : f32 to vector<128x128xf32>
      %20 = arith.maximumf %18, %19 : vector<128x128xf32>
      %c0_14 = arith.constant 0 : index
      %c0_15 = arith.constant 0 : index
      %21 = vector.load %arg5[%c0_14, %c0_15] : memref<128x128xf32, #tpu.memory_space<vmem>>, vector<128x128xf32>
      tpu.vector_store %arg5[%c0_14, %c0_15], %20 {strides = array<i32>} : memref<128x128xf32, #tpu.memory_space<vmem>>, vector<128x128xf32>,
    } else {
    }
    return
  }
  func.func @transform_0(%arg0: i32, %arg1: i32) -> (i32, i32) {
    %c0_i32 = arith.constant 0 : i32
    return %arg0, %arg1 : i32, i32
  }
  func.func @transform_1(%arg0: i32, %arg1: i32) -> (i32, i32) {
    %c0_i32 = arith.constant 0 : i32
    %c0_i32_0 = arith.constant 0 : i32
    %c0_i32_1 = arith.constant 0 : i32
    return %c0_i32, %c0_i32_0 : i32, i32
  }
  func.func @transform_2(%arg0: i32, %arg1: i32) -> (i32, i32) {
    %c0_i32 = arith.constant 0 : i32
    %c0_i32_0 = arith.constant 0 : i32
    %c0_i32_1 = arith.constant 0 : i32
    return %c0_i32, %c0_i32_0 : i32, i32
  }
  func.func @transform_3(%arg0: i32, %arg1: i32) -> (i32, i32) {
    %c0_i32 = arith.constant 0 : i32
    %c0_i32_0 = arith.constant 0 : i32
    return %arg0, %c0_i32 : i32, i32
  }
}

</mosaic_0001>

<bundles_post_ra>
// kernel: _gcn_forward.1
= control target key start
LH: loop header
LB: loop body
LE: loop exit
PB: predicated region body
PF: predicated region fallthrough
CT: control target
= control target key end

     0   :  { %s609_s1 = inlined_call_operand.vmem [shape: bf16[128,128], index: 1, kind: input, shape index: {}]   ;;  %s610_s0 = inlined_call_operand.vmem [shape: bf16[128,128], index: 0, kind: input, shape index: {}]   ;;  %s611_s2 = inlined_call_operand.vmem [shape: f32[1,128], index: 2, kind: input, shape index: {}]   ;;  %s612_s3 = inlined_call_operand.vmem [shape: f32[128,128], index: 3, kind: output, shape index: {}]  }
   0x1   :  { %v474_v0 = vld [vmem:[%s609_s1] sm:$0xff]   ;;  %v475_v1 = vld [vmem:[%s609_s1 + $0x8] sm:$0xff]   ;;  %v476_v2 = vld [vmem:[%s609_s1 + $0x10] sm:$0xff]  }
   0x2   :  { %426 = vmatprep.subr.bf16.mxu0 %v474_v0  ;;  %458 = vmatprep.subr.bf16.mxu1 %v474_v0  ;;  %v477_v3 = vld [vmem:[%s609_s1 + $0x18] sm:$0xff]   ;;  %v482_v4 = vld [vmem:[%s610_s0] sm:$0xff]   ;;  %v479_v7 = vld [vmem:[%s609_s1 + $0x28] sm:$0xff]  }
   0x3   :  { %427 = vmatpush3.bf16.msra.mxu0 %v474_v0  ;;  %466 = vmatpush3.bf16.msra.mxu1 %v474_v0  ;;  %v483_v5 = vld [vmem:[%s610_s0 + $0x20] sm:$0xff]   ;;  %v480_v8 = vld [vmem:[%s609_s1 + $0x30] sm:$0xff]   ;;  %v481_v9 = vld [vmem:[%s609_s1 + $0x38] sm:$0xff]  }
   0x4   :  { %428 = vmatprep.subr.bf16.mxu0 %v475_v1  ;;  %459 = vmatprep.subr.bf16.mxu1 %v475_v1  ;;  %v478_v6 = vld [vmem:[%s609_s1 + $0x20] sm:$0xff]   ;;  %v484_v10 = vld [vmem:[%s610_s0 + $0x8] sm:$0xff]   ;;  %v486_v12 = vld [vmem:[%s610_s0 + $0x10] sm:$0xff]  }
   0x5   :  { %442 = vmatprep.mubr.bf16.mxu0 %v482_v4  ;;  %450 = vmatprep.mubr.bf16.mxu1 %v483_v5  ;;  %v485_v11 = vld [vmem:[%s610_s0 + $0x28] sm:$0xff]   ;;  %v487_v13 = vld [vmem:[%s610_s0 + $0x30] sm:$0xff]   ;;  %v488_v14 = vld [vmem:[%s610_s0 + $0x18] sm:$0xff]  }
   0x6   :  { %v489_v15 = vld [vmem:[%s610_s0 + $0x38] sm:$0xff]   ;;  %v409_v16 = vld [vmem:[%s611_s2] ss:$0 sm:$0xff] }
   0x7   :  { %429 = vmatpush3.bf16.msra.mxu0 %v475_v1  ;;  %467 = vmatpush3.bf16.msra.mxu1 %v475_v1 }
   0x8   :  { %430 = vmatprep.subr.bf16.mxu0 %v476_v2  ;;  %460 = vmatprep.subr.bf16.mxu1 %v476_v2 }
   0xb   :  { %431 = vmatpush3.bf16.msra.mxu0 %v476_v2  ;;  %468 = vmatpush3.bf16.msra.mxu1 %v476_v2 }
   0xc   :  { %432 = vmatprep.subr.bf16.mxu0 %v477_v3  ;;  %461 = vmatprep.subr.bf16.mxu1 %v477_v3 }
   0xf   :  { %433 = vmatpush3.bf16.msra.mxu0 %v477_v3  ;;  %469 = vmatpush3.bf16.msra.mxu1 %v477_v3 }
  0x10   :  { %434 = vmatprep.subr.bf16.mxu0 %v478_v6  ;;  %462 = vmatprep.subr.bf16.mxu1 %v478_v6 }
  0x13   :  { %435 = vmatpush3.bf16.msra.mxu0 %v478_v6  ;;  %470 = vmatpush3.bf16.msra.mxu1 %v478_v6 }
  0x14   :  { %436 = vmatprep.subr.bf16.mxu0 %v479_v7  ;;  %463 = vmatprep.subr.bf16.mxu1 %v479_v7 }
  0x17   :  { %437 = vmatpush3.bf16.msra.mxu0 %v479_v7  ;;  %471 = vmatpush3.bf16.msra.mxu1 %v479_v7 }
  0x18   :  { %438 = vmatprep.subr.bf16.mxu0 %v480_v8  ;;  %464 = vmatprep.subr.bf16.mxu1 %v480_v8 }
  0x1b   :  { %439 = vmatpush3.bf16.msra.mxu0 %v480_v8  ;;  %472 = vmatpush3.bf16.msra.mxu1 %v480_v8 }
  0x1c   :  { %440 = vmatprep.subr.bf16.mxu0 %v481_v9  ;;  %465 = vmatprep.subr.bf16.mxu1 %v481_v9 }
  0x1f   :  { %441 = vmatpush3.bf16.msra.mxu0 %v481_v9  ;;  %473 = vmatpush3.bf16.msra.mxu1 %v481_v9 }
  0x22   :  { %443 = vmatmul.mubr.bf16.vlgmr.msra.gmra.mrb[0].mxu0 %v484_v10  ;;  %451 = vmatmul.mubr.bf16.vlgmr.msra.gmra.mrb[0].mxu1 %v485_v11 }
  0x23   :  { %446 = vmatprep.mubr.bf16.mxu0 %v486_v12  ;;  %454 = vmatprep.mubr.bf16.mxu1 %v487_v13 }
  0x2a   :  { %447 = vmatmul.mubr.bf16.gmra.mrb[4].mxu0 %v488_v14  ;;  %455 = vmatmul.mubr.bf16.gmra.mrb[4].mxu1 %v489_v15 }
  0xf5   :  { %v444_v17 = vpop.f32.mrb[0].mxu0  ;;  %v452_v18 = vpop.f32.mrb[0].mxu1 }
  0xf6   :  { %v341_v19 = vadd.f32 %v444_v17, %v409_v16  ;;  %v349_v20 = vadd.f32 %v452_v18, %v409_v16  ;;  %v218_v21 = vpop.f32.mrb[1].mxu0  ;;  %v250_v22 = vpop.f32.mrb[1].mxu1 }
  0xf7   :  { %v339_v23 = vadd.f32 %v409_v16, %v218_v21  ;;  %v347_v24 = vadd.f32 %v409_v16, %v250_v22  ;;  %v445_v25 = vpop.f32.mrb[2].mxu0  ;;  %v453_v26 = vpop.f32.mrb[2].mxu1 }
  0xf8   :  { %v357_v27 = vmax.f32 %v341_v19, 0.0  ;;  %v365_v28 = vmax.f32 %v349_v20, 0.0  ;;  %v342_v29 = vadd.f32 %v445_v25, %v409_v16  ;;  %v350_v30 = vadd.f32 %v453_v26, %v409_v16  ;;  %v221_v31 = vpop.f32.mrb[3].mxu0  ;;  %v253_v32 = vpop.f32.mrb[3].mxu1 }
  0xf9   :  { %v355_v33 = vmax.f32 %v339_v23, 0.0  ;;  %v363_v34 = vmax.f32 %v347_v24, 0.0  ;;  %v340_v35 = vadd.f32 %v409_v16, %v221_v31  ;;  %v348_v36 = vadd.f32 %v409_v16, %v253_v32 }
  0xfa   :  { %373 = vst [vmem:[%s612_s3 + $0x10] sm:$0xff] %v357_v27  ;;  %381 = vst [vmem:[%s612_s3 + $0x50] sm:$0xff] %v365_v28  ;;  %v358_v37 = vmax.f32 %v342_v29, 0.0  ;;  %v366_v38 = vmax.f32 %v350_v30, 0.0 }
  0xfb   :  { %371 = vst [vmem:[%s612_s3] sm:$0xff] %v355_v33  ;;  %379 = vst [vmem:[%s612_s3 + $0x40] sm:$0xff] %v363_v34  ;;  %v356_v39 = vmax.f32 %v340_v35, 0.0  ;;  %v364_v40 = vmax.f32 %v348_v36, 0.0 }
  0xfc   :  { %374 = vst [vmem:[%s612_s3 + $0x18] sm:$0xff] %v358_v37  ;;  %382 = vst [vmem:[%s612_s3 + $0x58] sm:$0xff] %v366_v38 }
  0xfd   :  { %372 = vst [vmem:[%s612_s3 + $0x8] sm:$0xff] %v356_v39  ;;  %380 = vst [vmem:[%s612_s3 + $0x48] sm:$0xff] %v364_v40  ;;  %v448_v41 = vpop.f32.mrb[4].mxu0  ;;  %v456_v42 = vpop.f32.mrb[4].mxu1 }
  0xfe   :  { %v345_v43 = vadd.f32 %v448_v41, %v409_v16  ;;  %v353_v44 = vadd.f32 %v456_v42, %v409_v16  ;;  %v234_v45 = vpop.f32.mrb[5].mxu0  ;;  %v266_v46 = vpop.f32.mrb[5].mxu1 }
  0xff   :  { %v343_v47 = vadd.f32 %v409_v16, %v234_v45  ;;  %v351_v48 = vadd.f32 %v409_v16, %v266_v46  ;;  %v449_v49 = vpop.f32.mrb[6].mxu0  ;;  %v457_v50 = vpop.f32.mrb[6].mxu1 }
 0x100   :  { %v361_v51 = vmax.f32 %v345_v43, 0.0  ;;  %v369_v52 = vmax.f32 %v353_v44, 0.0  ;;  %v346_v53 = vadd.f32 %v449_v49, %v409_v16  ;;  %v354_v54 = vadd.f32 %v457_v50, %v409_v16  ;;  %v237_v55 = vpop.f32.mrb[7].mxu0  ;;  %v269_v56 = vpop.f32.mrb[7].mxu1 }
 0x101   :  { %v359_v57 = vmax.f32 %v343_v47, 0.0  ;;  %v367_v58 = vmax.f32 %v351_v48, 0.0  ;;  %v344_v59 = vadd.f32 %v409_v16, %v237_v55  ;;  %v352_v60 = vadd.f32 %v409_v16, %v269_v56 }
 0x102   :  { %377 = vst [vmem:[%s612_s3 + $0x30] sm:$0xff] %v361_v51  ;;  %385 = vst [vmem:[%s612_s3 + $0x70] sm:$0xff] %v369_v52  ;;  %v362_v61 = vmax.f32 %v346_v53, 0.0  ;;  %v370_v62 = vmax.f32 %v354_v54, 0.0 }
 0x103   :  { %375 = vst [vmem:[%s612_s3 + $0x20] sm:$0xff] %v359_v57  ;;  %383 = vst [vmem:[%s612_s3 + $0x60] sm:$0xff] %v367_v58  ;;  %v360_v63 = vmax.f32 %v344_v59, 0.0  ;;  %v368_v0 = vmax.f32 %v352_v60, 0.0 }
 0x104   :  { %378 = vst [vmem:[%s612_s3 + $0x38] sm:$0xff] %v362_v61  ;;  %386 = vst [vmem:[%s612_s3 + $0x78] sm:$0xff] %v370_v62 }
 0x105   :  { %376 = vst [vmem:[%s612_s3 + $0x28] sm:$0xff] %v360_v63  ;;  %384 = vst [vmem:[%s612_s3 + $0x68] sm:$0xff] %v368_v0 }

</bundles_post_ra>
